<compile_context>
chip_gen: v5e
topology: v5e:2x2
jax: 0.10.0
libtpu: 0.0.40
codegen_flags: <defaults>
</compile_context>

<pallas_src>
import jax
import jax.numpy as jnp
from jax.experimental import pallas as pl
from jax.experimental.pallas import tpu as pltpu

_LANES = 128


def _predictor_kernel(x_ref, w_ref, b_ref, o_ref):
    # x_ref: (rb, 128, F) VMEM; w_ref: (1, F) VMEM; b_ref: (1, 1) SMEM; o_ref: (rb, 128)
    x = x_ref[...].astype(jnp.float32)           # (rb, 128, F)
    w = w_ref[...].astype(jnp.float32)           # (1, F) broadcasts over (rb, 128, F)
    y = jnp.sum(x * w, axis=-1) + b_ref[0, 0]    # (rb, 128) lane-dense
    o_ref[...] = jnp.tanh(y).astype(o_ref.dtype)


def _choose_block_rows(r: int, requested: int | None) -> int:
    rb = 128 if requested is None else int(requested)  # default: 128*128 = 16384 rows / tile
    if rb >= r or r <= 8:
        return r                       # single full block (block == full dim is always legal)
    return max(8, (rb // 8) * 8)       # sublane-aligned (f32) block strictly inside R


def predictor_forward(img_fea: jax.Array, weight: jax.Array, bias: jax.Array,
                      *, block_rows: int | None = None,
                      min_rows_for_pallas: int = 0) -> jax.Array:
    """img_fea: (N, F); weight: (1, F) as in torch nn.Linear(F, 1); bias: (1,)."""
    n, f = img_fea.shape
    assert weight.shape == (1, f), weight.shape
    assert bias.shape == (1,), bias.shape

    if n < min_rows_for_pallas:
        # Tiny batches: fixed pallas_call + per-step overhead dwarfs the work.
        return jnp.tanh(jnp.sum(img_fea * weight, axis=-1, keepdims=True) + bias
                        ).astype(img_fea.dtype)

    out_dtype = img_fea.dtype
    n_pad = pl.cdiv(n, _LANES) * _LANES
    x = img_fea if n_pad == n else jnp.pad(img_fea, ((0, n_pad - n), (0, 0)))
    r = n_pad // _LANES
    x3 = x.reshape(r, _LANES, f)                 # contiguous, layout-preserving reshape

    b = bias.reshape(1, 1).astype(jnp.float32)
    rb = _choose_block_rows(r, block_rows)
    grid = (pl.cdiv(r, rb),)

    out = pl.pallas_call(
        _predictor_kernel,
        out_shape=jax.ShapeDtypeStruct((r, _LANES), out_dtype),
        grid_spec=pltpu.PrefetchScalarGridSpec(
            num_scalar_prefetch=0,
            grid=grid,
            in_specs=[
                pl.BlockSpec((rb, _LANES, f), lambda i: (i, 0, 0)),
                pl.BlockSpec((1, f), lambda i: (0, 0)),
                pl.BlockSpec(memory_space=pltpu.MemorySpace.SMEM),
            ],
            out_specs=pl.BlockSpec((rb, _LANES), lambda i: (i, 0)),
        ),
        compiler_params=pltpu.CompilerParams(
            dimension_semantics=("parallel",),       # shards row tiles across v7x's 2 TCs
            vmem_limit_bytes=40 * 1024 * 1024,       # double-buffered lane-padded blocks + headroom
        ),
    )(x3, weight, b)

    return out.reshape(n_pad, 1)[:n]


def predictor_reference(img_fea, weight, bias):
    return jnp.tanh(jnp.sum(img_fea.astype(jnp.float32) * weight.astype(jnp.float32),
                            axis=-1, keepdims=True) + bias).astype(img_fea.dtype)


if __name__ == "__main__":
    key = jax.random.PRNGKey(0)
    k_x1, k_x2, k_w, k_b = jax.random.split(key, 4)

    FEA_DIM = 64
    weight = jax.random.normal(k_w, (1, FEA_DIM), dtype=jnp.float32) * 0.1
    bias = jax.random.normal(k_b, (1,), dtype=jnp.float32) * 0.1

    # Case 1: small batch, N a multiple of 128 -> single full block, lane-dense output.
    x1 = jax.random.normal(k_x1, (512, FEA_DIM), dtype=jnp.float32)
    out1 = jax.block_until_ready(predictor_forward(x1, weight, bias))
    ref1 = predictor_reference(x1, weight, bias)
    assert out1.shape == (512, 1), out1.shape
    assert jnp.allclose(out1, ref1, atol=2e-5, rtol=2e-5), \
        f"max abs err {jnp.max(jnp.abs(out1 - ref1))}"

    # Case 2: ragged batch + multi-step pipelined grid with a partial last block.
    x2 = jax.random.normal(k_x2, (2085, FEA_DIM), dtype=jnp.float32)
    out2 = jax.block_until_ready(predictor_forward(x2, weight, bias, block_rows=8))
    ref2 = predictor_reference(x2, weight, bias)
    assert out2.shape == (2085, 1), out2.shape
    assert jnp.allclose(out2, ref2, atol=2e-5, rtol=2e-5), \
        f"max abs err {jnp.max(jnp.abs(out2 - ref2))}"

    print("KERNEL_OK")
</pallas_src>

<mosaic_0001>
module attributes {stable_mosaic.version = 11 : i64} {
  func.func @_predictor_kernel(%arg0: i32, %arg1: memref<4x128x64xf32, #tpu.memory_space<vmem>>, %arg2: memref<1x64xf32, #tpu.memory_space<vmem>>, %arg3: memref<1x1xf32, #tpu.memory_space<smem>>, %arg4: memref<4x128xf32, #tpu.memory_space<vmem>>) attributes {dimension_semantics = [#tpu.dimension_semantics<parallel>], iteration_bounds = array<i64: 1>, scalar_prefetch = 0 : i64, scratch_operands = 0 : i64, tpu.core_type = #tpu.core_type<tc>, window_params = [{transform_indices = @transform_0, window_bounds = array<i64: 4, 128, 64>}, {pipeline_mode = #tpu.pipeline_mode<synchronous>, transform_indices = @transform_1, window_bounds = array<i64: 1, 64>}, {transform_indices = @transform_2, window_bounds = array<i64: 1, 1>}, {transform_indices = @transform_3, window_bounds = array<i64: 4, 128>}]} {
    %c0 = arith.constant 0 : index
    %c0_0 = arith.constant 0 : index
    %c0_1 = arith.constant 0 : index
    %0 = vector.load %arg1[%c0, %c0_0, %c0_1] : memref<4x128x64xf32, #tpu.memory_space<vmem>>, vector<4x128x64xf32>
    %c0_2 = arith.constant 0 : index
    %c0_3 = arith.constant 0 : index
    %1 = vector.load %arg2[%c0_2, %c0_3] : memref<1x64xf32, #tpu.memory_space<vmem>>, vector<1x64xf32>
    %2 = vector.shape_cast %1 : vector<1x64xf32> to vector<1x1x64xf32>
    %3 = vector.broadcast %2 : vector<1x1x64xf32> to vector<4x128x64xf32>
    %4 = arith.mulf %0, %3 : vector<4x128x64xf32>
    %cst = arith.constant dense<0.000000e+00> : vector<4x128xf32>
    %5 = vector.multi_reduction <add>, %4, %cst [2] : vector<4x128x64xf32> to vector<4x128xf32>
    %c0_4 = arith.constant 0 : index
    %c0_5 = arith.constant 0 : index
    %6 = memref.load %arg3[%c0_4, %c0_5] : memref<1x1xf32, #tpu.memory_space<smem>>
    %7 = vector.broadcast %6 : f32 to vector<4x128xf32>
    %8 = arith.addf %5, %7 : vector<4x128xf32>
    %9 = math.tanh %8 : vector<4x128xf32>
    %c0_6 = arith.constant 0 : index
    %c0_7 = arith.constant 0 : index
    %10 = vector.load %arg4[%c0_6, %c0_7] : memref<4x128xf32, #tpu.memory_space<vmem>>, vector<4x128xf32>
    tpu.vector_store %arg4[%c0_6, %c0_7], %9 {strides = array<i32>} : memref<4x128xf32, #tpu.memory_space<vmem>>, vector<4x128xf32>,
    return
  }
  func.func @transform_0(%arg0: i32) -> (i32, i32, i32) {
    %c0_i32 = arith.constant 0 : i32
    %c0_i32_0 = arith.constant 0 : i32
    %c0_i32_1 = arith.constant 0 : i32
    return %arg0, %c0_i32, %c0_i32_0 : i32, i32, i32
  }
  func.func @transform_1(%arg0: i32) -> (i32, i32) {
    %c0_i32 = arith.constant 0 : i32
    %c0_i32_0 = arith.constant 0 : i32
    %c0_i32_1 = arith.constant 0 : i32
    return %c0_i32, %c0_i32_0 : i32, i32
  }
  func.func @transform_2(%arg0: i32) -> (i32, i32) {
    %c0_i32 = arith.constant 0 : i32
    %c0_i32_0 = arith.constant 0 : i32
    %c0_i32_1 = arith.constant 0 : i32
    return %c0_i32, %c0_i32_0 : i32, i32
  }
  func.func @transform_3(%arg0: i32) -> (i32, i32) {
    %c0_i32 = arith.constant 0 : i32
    %c0_i32_0 = arith.constant 0 : i32
    return %arg0, %c0_i32 : i32, i32
  }
}

</mosaic_0001>

<bundles_post_ra>
// kernel: tpu_custom_call.1
= control target key start
LH: loop header
LB: loop body
LE: loop exit
PB: predicated region body
PF: predicated region fallthrough
CT: control target
= control target key end

     0   :  { %vm148_vm0 = vcmask 523264   ;;  %s1466_s0 = inlined_call_operand.vmem [shape: f32[4,128,64], index: 0, kind: input, shape index: {}]   ;;  %s1467_s1 = inlined_call_operand.vmem [shape: f32[1,64], index: 1, kind: input, shape index: {}]   ;;  %s1468_s2 = inlined_call_operand.<no memory space> [shape: f32[1,1], index: 2, kind: input, shape index: {}]   ;;  %s1469_s3 = inlined_call_operand.hbm [shape: f32[4,128], index: 3, kind: output, shape index: {}]  }
   0x1   :  { %v18_v0 = vld [vmem:[%s1466_s0 + $0x10] sm:$0xff]  ;;  %v898_v1 = vld [vmem:[%s1467_s1] ss:$0 sm:$0xff]  ;;  %v19_v7 = vld [vmem:[%s1466_s0 + $0x18] sm:$0xff] }
   0x2   :  { %v16_v2 = vld [vmem:[%s1466_s0] sm:$0xff]  ;;  %v86_v4 = vmul.f32 %v898_v1, %v18_v0  ;;  %v17_v8 = vld [vmem:[%s1466_s0 + $0x8] sm:$0xff]  ;;  %v87_v13 = vmul.f32 %v898_v1, %v19_v7 }
   0x3   :  { %v20_v3 = vld [vmem:[%s1466_s0 + $0x20] sm:$0xff]  ;;  %v84_v5 = vmul.f32 %v898_v1, %v16_v2  ;;  %v21_v12 = vld [vmem:[%s1466_s0 + $0x28] sm:$0xff]  ;;  %v85_v14 = vmul.f32 %v898_v1, %v17_v8 }
   0x4   :  { %v88_v6 = vmul.f32 %v898_v1, %v20_v3  ;;  %v155_v9 = vsel %vm148_vm0, %v86_v4, 0.0 }
   0x5   :  { %v149_v10 = vsel %vm148_vm0, %v84_v5, 0.0  ;;  %156 = vadd.xlane.f32.xlu1 %v155_v9 }
   0x6   :  { %v161_v11 = vsel %vm148_vm0, %v88_v6, 0.0  ;;  %150 = vadd.xlane.f32.xlu0 %v149_v10 }
   0x7   :  { %162 = vadd.xlane.f32.xlu2 %v161_v11 }
   0x8   :  { %9 = vsyncpa [#allocation4], 0  ;;  %v89_v15 = vmul.f32 %v898_v1, %v21_v12  ;;  %v158_v16 = vsel %vm148_vm0, %v87_v13, 0.0  ;;  %v152_v17 = vsel %vm148_vm0, %v85_v14, 0.0  ;;  %v23_v19 = vld [vmem:[%s1466_s0 + $0x38] sm:$0xff]  ;;  %v22_v20 = vld [vmem:[%s1466_s0 + $0x30] sm:$0xff] }
   0x9   :  { %v24_v21 = vld [vmem:[%s1466_s0 + $0x40] sm:$0xff]  ;;  %v91_v22 = vmul.f32 %v898_v1, %v23_v19  ;;  %v90_v23 = vmul.f32 %v898_v1, %v22_v20  ;;  %v26_v28 = vld [vmem:[%s1466_s0 + $0x50] sm:$0xff]  ;;  %v25_v29 = vld [vmem:[%s1466_s0 + $0x48] sm:$0xff]  ;;  %vm540_vm1 = vcmask 130112   ;;  %vm544_vm2 = vcmask 195712  }
   0xa   :  { %v164_v18 = vsel %vm148_vm0, %v89_v15, 0.0  ;;  %v92_v24 = vmul.f32 %v898_v1, %v24_v21  ;;  %v27_v30 = vld [vmem:[%s1466_s0 + $0x58] sm:$0xff]  ;;  %v94_v31 = vmul.f32 %v898_v1, %v26_v28  ;;  %v93_v32 = vmul.f32 %v898_v1, %v25_v29  ;;  %v29_v37 = vld [vmem:[%s1466_s0 + $0x68] sm:$0xff]  ;;  %v28_v38 = vld [vmem:[%s1466_s0 + $0x60] sm:$0xff] }
   0xb   :  { %v170_v25 = vsel %vm148_vm0, %v91_v22, 0.0  ;;  %v167_v26 = vsel %vm148_vm0, %v90_v23, 0.0  ;;  %v95_v33 = vmul.f32 %v898_v1, %v27_v30  ;;  %v30_v39 = vld [vmem:[%s1466_s0 + $0x70] sm:$0xff]  ;;  %v97_v40 = vmul.f32 %v898_v1, %v29_v37  ;;  %v32_v46 = vld [vmem:[%s1466_s0 + $0x80] sm:$0xff]  ;;  %v31_v47 = vld [vmem:[%s1466_s0 + $0x78] sm:$0xff] }
   0xc   :  { %v173_v27 = vsel %vm148_vm0, %v92_v24, 0.0  ;;  %v179_v34 = vsel %vm148_vm0, %v94_v31, 0.0  ;;  %v176_v35 = vsel %vm148_vm0, %v93_v32, 0.0  ;;  %v96_v41 = vmul.f32 %v898_v1, %v28_v38  ;;  %v33_v48 = vld [vmem:[%s1466_s0 + $0x88] sm:$0xff]  ;;  %v35_v55 = vld [vmem:[%s1466_s0 + $0x98] sm:$0xff]  ;;  %v34_v56 = vld [vmem:[%s1466_s0 + $0x90] sm:$0xff] }
   0xd   :  { %159 = vadd.xlane.f32.xlu1 %v158_v16  ;;  %v182_v36 = vsel %vm148_vm0, %v95_v33, 0.0  ;;  %v98_v42 = vmul.f32 %v898_v1, %v30_v39  ;;  %v188_v43 = vsel %vm148_vm0, %v97_v40, 0.0  ;;  %v100_v49 = vmul.f32 %v898_v1, %v32_v46  ;;  %v36_v57 = vld [vmem:[%s1466_s0 + $0xa0] sm:$0xff]  ;;  %v38_v0 = vld [vmem:[%s1466_s0 + $0xb0] sm:$0xff]  ;;  %v37_v2 = vld [vmem:[%s1466_s0 + $0xa8] sm:$0xff] }
   0xe   :  { %153 = vadd.xlane.f32.xlu0 %v152_v17  ;;  %v185_v44 = vsel %vm148_vm0, %v96_v41, 0.0  ;;  %v99_v50 = vmul.f32 %v898_v1, %v31_v47  ;;  %v101_v51 = vmul.f32 %v898_v1, %v33_v48  ;;  %v103_v58 = vmul.f32 %v898_v1, %v35_v55  ;;  %v39_v3 = vld [vmem:[%s1466_s0 + $0xb8] sm:$0xff]  ;;  %v41_v10 = vld [vmem:[%s1466_s0 + $0xc8] sm:$0xff]  ;;  %v40_v11 = vld [vmem:[%s1466_s0 + $0xc0] sm:$0xff] }
   0xf   :  { %165 = vadd.xlane.f32.xlu2 %v164_v18  ;;  %v191_v45 = vsel %vm148_vm0, %v98_v42, 0.0  ;;  %v197_v52 = vsel %vm148_vm0, %v100_v49, 0.0  ;;  %v102_v59 = vmul.f32 %v898_v1, %v34_v56  ;;  %v104_v60 = vmul.f32 %v898_v1, %v36_v57  ;;  %v42_v12 = vld [vmem:[%s1466_s0 + $0xd0] sm:$0xff]  ;;  %v44_v19 = vld [vmem:[%s1466_s0 + $0xe0] sm:$0xff]  ;;  %v43_v20 = vld [vmem:[%s1466_s0 + $0xd8] sm:$0xff] }
  0x10   :  { %v194_v53 = vsel %vm148_vm0, %v99_v50, 0.0  ;;  %v200_v54 = vsel %vm148_vm0, %v101_v51, 0.0  ;;  %v206_v61 = vsel %vm148_vm0, %v103_v58, 0.0  ;;  %v106_v4 = vmul.f32 %v898_v1, %v38_v0  ;;  %v45_v21 = vld [vmem:[%s1466_s0 + $0xe8] sm:$0xff]  ;;  %v47_v28 = vld [vmem:[%s1466_s0 + $0xf8] sm:$0xff]  ;;  %v46_v29 = vld [vmem:[%s1466_s0 + $0xf0] sm:$0xff] }
  0x11   :  { %v203_v62 = vsel %vm148_vm0, %v102_v59, 0.0  ;;  %v209_v63 = vsel %vm148_vm0, %v104_v60, 0.0  ;;  %v105_v5 = vmul.f32 %v898_v1, %v37_v2  ;;  %v107_v6 = vmul.f32 %v898_v1, %v39_v3  ;;  %v48_v30 = vld [vmem:[%s1466_s0 + $0x100] sm:$0xff]  ;;  %v50_v37 = vld [vmem:[%s1466_s0 + $0x110] sm:$0xff]  ;;  %v49_v38 = vld [vmem:[%s1466_s0 + $0x108] sm:$0xff] }
  0x12   :  { %v215_v7 = vsel %vm148_vm0, %v106_v4, 0.0  ;;  %v109_v13 = vmul.f32 %v898_v1, %v41_v10  ;;  %v108_v14 = vmul.f32 %v898_v1, %v40_v11  ;;  %v110_v15 = vmul.f32 %v898_v1, %v42_v12  ;;  %v51_v39 = vld [vmem:[%s1466_s0 + $0x118] sm:$0xff]  ;;  %v53_v46 = vld [vmem:[%s1466_s0 + $0x128] sm:$0xff]  ;;  %v52_v47 = vld [vmem:[%s1466_s0 + $0x120] sm:$0xff] }
  0x13   :  { %v212_v8 = vsel %vm148_vm0, %v105_v5, 0.0  ;;  %v218_v9 = vsel %vm148_vm0, %v107_v6, 0.0  ;;  %v112_v22 = vmul.f32 %v898_v1, %v44_v19  ;;  %v111_v23 = vmul.f32 %v898_v1, %v43_v20  ;;  %v54_v48 = vld [vmem:[%s1466_s0 + $0x130] sm:$0xff]  ;;  %v56_v55 = vld [vmem:[%s1466_s0 + $0x140] sm:$0xff]  ;;  %v55_v56 = vld [vmem:[%s1466_s0 + $0x138] sm:$0xff] }
  0x14   :  { %v224_v16 = vsel %vm148_vm0, %v109_v13, 0.0  ;;  %v221_v17 = vsel %vm148_vm0, %v108_v14, 0.0  ;;  %v227_v18 = vsel %vm148_vm0, %v110_v15, 0.0  ;;  %v113_v24 = vmul.f32 %v898_v1, %v45_v21  ;;  %v57_v57 = vld [vmem:[%s1466_s0 + $0x148] sm:$0xff]  ;;  %v64_v2 = vld [vmem:[%s1466_s0 + $0x180] sm:$0xff]  ;;  %v66_v3 = vld [vmem:[%s1466_s0 + $0x190] sm:$0xff] }
  0x15   :  { %171 = vadd.xlane.f32.xlu1 %v170_v25  ;;  %v233_v25 = vsel %vm148_vm0, %v112_v22, 0.0  ;;  %v115_v31 = vmul.f32 %v898_v1, %v47_v28  ;;  %v114_v32 = vmul.f32 %v898_v1, %v46_v29  ;;  %v116_v33 = vmul.f32 %v898_v1, %v48_v30  ;;  %v65_v0 = vld [vmem:[%s1466_s0 + $0x188] sm:$0xff]  ;;  %v68_v10 = vld [vmem:[%s1466_s0 + $0x1a0] sm:$0xff]  ;;  %v67_v11 = vld [vmem:[%s1466_s0 + $0x198] sm:$0xff] }
  0x16   :  { %168 = vadd.xlane.f32.xlu0 %v167_v26  ;;  %v230_v26 = vsel %vm148_vm0, %v111_v23, 0.0  ;;  %v118_v40 = vmul.f32 %v898_v1, %v50_v37  ;;  %v117_v41 = vmul.f32 %v898_v1, %v49_v38  ;;  %v119_v42 = vmul.f32 %v898_v1, %v51_v39  ;;  %v69_v12 = vld [vmem:[%s1466_s0 + $0x1a8] sm:$0xff]  ;;  %v71_v23 = vld [vmem:[%s1466_s0 + $0x1b8] sm:$0xff] }
  0x17   :  { %174 = vadd.xlane.f32.xlu2 %v173_v27  ;;  %v236_v27 = vsel %vm148_vm0, %v113_v24, 0.0  ;;  %v121_v49 = vmul.f32 %v898_v1, %v53_v46  ;;  %v120_v50 = vmul.f32 %v898_v1, %v52_v47  ;;  %v122_v51 = vmul.f32 %v898_v1, %v54_v48  ;;  %v70_v24 = vld [vmem:[%s1466_s0 + $0x1b0] sm:$0xff] }
  0x18   :  { %v124_v58 = vmul.f32 %v898_v1, %v56_v55  ;;  %v123_v59 = vmul.f32 %v898_v1, %v55_v56  ;;  %v125_v60 = vmul.f32 %v898_v1, %v57_v57  ;;  %v133_v4 = vmul.f32 %v898_v1, %v65_v0 }
  0x19   :  { %v132_v5 = vmul.f32 %v898_v1, %v64_v2  ;;  %v134_v6 = vmul.f32 %v898_v1, %v66_v3  ;;  %v136_v13 = vmul.f32 %v898_v1, %v68_v10  ;;  %v135_v14 = vmul.f32 %v898_v1, %v67_v11  ;;  %v74_v10 = vld [vmem:[%s1466_s0 + $0x1d0] sm:$0xff] }
  0x1a   :  { %v137_v15 = vmul.f32 %v898_v1, %v69_v12  ;;  %v1137_v19 = vstv %s1468_s2  ;;  %v139_v29 = vmul.f32 %v898_v1, %v71_v23  ;;  %v138_v30 = vmul.f32 %v898_v1, %v70_v24  ;;  %v75_v12 = vld [vmem:[%s1466_s0 + $0x1d8] sm:$0xff]  ;;  %s706_s2 = sshll.u32 %s1469_s3, 4  ;;  %s707_s2 = int_to_ptr.hbm [resolvable:$true] %s706_s2 }
  0x1b   :  { %v305_v20 = vsel %vm148_vm0, %v136_v13, 0.0  ;;  %v302_v21 = vsel %vm148_vm0, %v135_v14, 0.0  ;;  %vm548_vm3 = vcmask 261312   ;;  %vm552_vm4 = vcmask 326912  }
  0x1c   :  { %v308_v22 = vsel %vm148_vm0, %v137_v15, 0.0  ;;  %v314_v39 = vsel %vm148_vm0, %v139_v29, 0.0  ;;  %vm556_vm5 = vcmask 392512   ;;  %v143_v23 = vmul.f32 %v898_v1, %v75_v12  ;;  %v77_v12 = vld [vmem:[%s1466_s0 + $0x1e8] sm:$0xff] }
  0x1d   :  { %180 = vadd.xlane.f32.xlu1 %v179_v34  ;;  %v242_v34 = vsel %vm148_vm0, %v115_v31, 0.0  ;;  %vm560_vm6 = vcmask 458112   ;;  %vm564_vm7 = vcmask 523712   ;;  %vm568_vm8 = vcmask 589312  }
  0x1e   :  { %177 = vadd.xlane.f32.xlu0 %v176_v35  ;;  %v239_v35 = vsel %vm148_vm0, %v114_v32, 0.0  ;;  %vm572_vm9 = vcmask 654912   ;;  %vm576_vm10 = vcmask 720512   ;;  %vm580_vm11 = vcmask 786112  }
  0x1f   :  { %183 = vadd.xlane.f32.xlu2 %v182_v36  ;;  %v245_v36 = vsel %vm148_vm0, %v116_v33, 0.0  ;;  %vm584_vm12 = vcmask 851712   ;;  %vm588_vm13 = vcmask 917312   ;;  %vm592_vm14 = vcmask 982912  }
  0x20   :  { %vm596_vm15 = vcmask 1048512  }
  0x25   :  { %189 = vadd.xlane.f32.xlu1 %v188_v43  ;;  %v251_v43 = vsel %vm148_vm0, %v118_v40, 0.0  ;;  %v311_v40 = vsel %vm148_vm0, %v138_v30, 0.0 }
  0x26   :  { %186 = vadd.xlane.f32.xlu0 %v185_v44  ;;  %v248_v44 = vsel %vm148_vm0, %v117_v41, 0.0  ;;  %v73_v41 = vld [vmem:[%s1466_s0 + $0x1c8] sm:$0xff] }
  0x27   :  { %192 = vadd.xlane.f32.xlu2 %v191_v45  ;;  %v254_v45 = vsel %vm148_vm0, %v119_v42, 0.0  ;;  %v141_v46 = vmul.f32 %v898_v1, %v73_v41  ;;  %v76_v41 = vld [vmem:[%s1466_s0 + $0x1e0] sm:$0xff] }
  0x2d   :  { %198 = vadd.xlane.f32.xlu1 %v197_v52  ;;  %v260_v52 = vsel %vm148_vm0, %v121_v49, 0.0 }
  0x2e   :  { %195 = vadd.xlane.f32.xlu0 %v194_v53  ;;  %v257_v53 = vsel %vm148_vm0, %v120_v50, 0.0 }
  0x2f   :  { %201 = vadd.xlane.f32.xlu2 %v200_v54  ;;  %v263_v54 = vsel %vm148_vm0, %v122_v51, 0.0 }
  0x35   :  { %207 = vadd.xlane.f32.xlu1 %v206_v61  ;;  %v269_v61 = vsel %vm148_vm0, %v124_v58, 0.0 }
  0x36   :  { %204 = vadd.xlane.f32.xlu0 %v203_v62  ;;  %v266_v62 = vsel %vm148_vm0, %v123_v59, 0.0 }
  0x37   :  { %210 = vadd.xlane.f32.xlu2 %v209_v63  ;;  %v272_v63 = vsel %vm148_vm0, %v125_v60, 0.0 }
  0x3d   :  { %216 = vadd.xlane.f32.xlu1 %v215_v7  ;;  %v296_v7 = vsel %vm148_vm0, %v133_v4, 0.0 }
  0x3e   :  { %213 = vadd.xlane.f32.xlu0 %v212_v8  ;;  %v293_v8 = vsel %vm148_vm0, %v132_v5, 0.0 }
  0x3f   :  { %219 = vadd.xlane.f32.xlu2 %v218_v9  ;;  %v299_v9 = vsel %vm148_vm0, %v134_v6, 0.0 }
  0x45   :  { %225 = vadd.xlane.f32.xlu1 %v224_v16 }
  0x46   :  { %222 = vadd.xlane.f32.xlu0 %v221_v17 }
  0x47   :  { %228 = vadd.xlane.f32.xlu2 %v227_v18 }
  0x4d   :  { %234 = vadd.xlane.f32.xlu1 %v233_v25 }
  0x4e   :  { %231 = vadd.xlane.f32.xlu0 %v230_v26  ;;  %v72_v26 = vld [vmem:[%s1466_s0 + $0x1c0] sm:$0xff] }
  0x4f   :  { %237 = vadd.xlane.f32.xlu2 %v236_v27  ;;  %v140_v31 = vmul.f32 %v898_v1, %v72_v26 }
  0x51   :  { %v317_v42 = vsel %vm148_vm0, %v140_v31, 0.0 }
  0x55   :  { %243 = vadd.xlane.f32.xlu1 %v242_v34  ;;  %v535_v34 = vlaneseq }
  0x56   :  { %240 = vadd.xlane.f32.xlu0 %v239_v35 }
  0x57   :  { %246 = vadd.xlane.f32.xlu2 %v245_v36 }
  0x5d   :  { %252 = vadd.xlane.f32.xlu1 %v251_v43  ;;  %v58_v43 = vld [vmem:[%s1466_s0 + $0x150] sm:$0xff] }
  0x5e   :  { %249 = vadd.xlane.f32.xlu0 %v248_v44  ;;  %v59_v44 = vld [vmem:[%s1466_s0 + $0x158] sm:$0xff]  ;;  %v126_v48 = vmul.f32 %v898_v1, %v58_v43 }
  0x5f   :  { %255 = vadd.xlane.f32.xlu2 %v254_v45  ;;  %v1172_v45 = vand.u32 127, %v535_v34  ;;  %v127_v49 = vmul.f32 %v898_v1, %v59_v44  ;;  %v62_v44 = vld [vmem:[%s1466_s0 + $0x170] sm:$0xff] }
  0x60   :  { %v275_v3 = vsel %vm148_vm0, %v126_v48, 0.0 }
  0x61   :  { %v1178_v51 = vadd.s32 4294967272, %v1172_v45  ;;  %v1187_v55 = vadd.s32 4294967264, %v1172_v45  ;;  %v1190_v59 = vadd.s32 4294967256, %v1172_v45  ;;  %v278_v4 = vsel %vm148_vm0, %v127_v49, 0.0 }
  0x62   :  { %v1214_v15 = vadd.s32 4294967240, %v1172_v45  ;;  %v1251_v48 = vadd.s32 4294967216, %v1172_v45  ;;  %v144_v49 = vmul.f32 %v898_v1, %v76_v41 }
  0x65   :  { %261 = vadd.xlane.f32.xlu1 %v260_v52  ;;  %v1181_v52 = vadd.s32 4294967288, %v1172_v45 }
  0x66   :  { %258 = vadd.xlane.f32.xlu0 %v257_v53 }
  0x67   :  { %264 = vadd.xlane.f32.xlu2 %v263_v54  ;;  %v1184_v54 = vadd.s32 4294967280, %v1172_v45 }
  0x6d   :  { %270 = vadd.xlane.f32.xlu1 %v269_v61 }
  0x6e   :  { %267 = vadd.xlane.f32.xlu0 %v266_v62 }
  0x6f   :  { %273 = vadd.xlane.f32.xlu2 %v272_v63  ;;  %v320_v63 = vsel %vm148_vm0, %v141_v46, 0.0 }
  0x75   :  { %297 = vadd.xlane.f32.xlu1 %v296_v7 }
  0x76   :  { %294 = vadd.xlane.f32.xlu0 %v293_v8 }
  0x77   :  { %300 = vadd.xlane.f32.xlu2 %v299_v9  ;;  %v60_v9 = vld [vmem:[%s1466_s0 + $0x160] sm:$0xff] }
  0x78   :  { %v157_v16 = vpop.xlane.xlu1 %156 }
  0x79   :  { %v151_v17 = vpop.xlane.xlu0 %150  ;;  %v345_v25 = vadd.f32 %v1137_v19, %v157_v16 }
  0x7a   :  { %v163_v18 = vpop.xlane.xlu2 %162  ;;  %v343_v27 = vadd.f32 %v1137_v19, %v151_v17 }
  0x7b   :  { %v347_v28 = vadd.f32 %v1137_v19, %v163_v18  ;;  %717 = vtanh.f32 %v345_v25  ;;  %v128_v18 = vmul.f32 %v898_v1, %v60_v9  ;;  %v1227_v25 = vadd.s32 4294967232, %v1172_v45 }
  0x7c   :  { %719 = vtanh.f32 %v343_v27 }
  0x7d   :  { %306 = vadd.xlane.f32.xlu1 %v305_v20  ;;  %721 = vtanh.f32 %v347_v28  ;;  %v142_v20 = vmul.f32 %v898_v1, %v74_v10 }
  0x7e   :  { %303 = vadd.xlane.f32.xlu0 %v302_v21 }
  0x7f   :  { %309 = vadd.xlane.f32.xlu2 %v308_v22  ;;  %v1222_v22 = vadd.s32 4294967248, %v1172_v45 }
  0x80   :  { %v160_v32 = vpop.xlane.xlu1 %159 }
  0x81   :  { %v154_v33 = vpop.xlane.xlu0 %153  ;;  %v346_v35 = vadd.f32 %v1137_v19, %v160_v32  ;;  %v718_v47 = vpop.eup %717 }
  0x82   :  { %v344_v36 = vadd.f32 %v1137_v19, %v154_v33  ;;  %v166_v37 = vpop.xlane.xlu2 %165  ;;  %v720_v50 = vpop.eup %719  ;;  %v543_v11 = vperm.slane %v718_v47, %v1184_v54 }
  0x83   :  { %v348_v38 = vadd.f32 %v1137_v19, %v166_v37  ;;  %723 = vtanh.f32 %v346_v35  ;;  %v722_v53 = vpop.eup %721  ;;  %v537_v6 = vperm.slane %v720_v50, %v1172_v45  ;;  %v323_v37 = vsel %vm148_vm0, %v142_v20, 0.0 }
  0x84   :  { %725 = vtanh.f32 %v344_v36  ;;  %v551_v16 = vperm.slane %v722_v53, %v1187_v55  ;;  %v281_v36 = vsel %vm148_vm0, %v128_v18, 0.0  ;;  %v1284_v18 = vadd.s32 4294967192, %v1172_v45 }
  0x85   :  { %727 = vtanh.f32 %v348_v38  ;;  %315 = vadd.xlane.f32.xlu1 %v314_v39 }
  0x86   :  { %312 = vadd.xlane.f32.xlu0 %v311_v40  ;;  %v326_v40 = vsel %vm148_vm0, %v143_v23, 0.0 }
  0x87   :  { %318 = vadd.xlane.f32.xlu2 %v317_v42  ;;  %v61_v42 = vld [vmem:[%s1466_s0 + $0x168] sm:$0xff] }
  0x88   :  { %v172_v56 = vpop.xlane.xlu1 %171  ;;  %v129_v50 = vmul.f32 %v898_v1, %v61_v42  ;;  %v79_v42 = vld [vmem:[%s1466_s0 + $0x1f8] sm:$0xff] }
  0x89   :  { %v169_v57 = vpop.xlane.xlu0 %168  ;;  %v724_v58 = vpop.eup %723  ;;  %v350_v60 = vadd.f32 %v1137_v19, %v172_v56  ;;  %v1257_v56 = vadd.s32 4294967224, %v1172_v45 }
  0x8a   :  { %v349_v61 = vadd.f32 %v1137_v19, %v169_v57  ;;  %v175_v62 = vpop.xlane.xlu2 %174  ;;  %v726_v0 = vpop.eup %725  ;;  %v547_v7 = vperm.slane %v724_v58, %v1178_v51  ;;  %v130_v57 = vmul.f32 %v898_v1, %v62_v44  ;;  %v1261_v58 = vadd.s32 4294967208, %v1172_v45 }
  0x8b   :  { %v351_v2 = vadd.f32 %v1137_v19, %v175_v62  ;;  %v728_v5 = vpop.eup %727  ;;  %v539_v8 = vperm.slane %v726_v0, %v1181_v52  ;;  %729 = vtanh.f32 %v350_v60 }
  0x8c   :  { %731 = vtanh.f32 %v349_v61  ;;  %v555_v14 = vperm.slane %v728_v5, %v1190_v59  ;;  %v287_v10 = vsel %vm148_vm0, %v130_v57, 0.0 }
  0x8d   :  { %v541_v13 = vsel %vm540_vm1, %v539_v8, %v537_v6  ;;  %733 = vtanh.f32 %v351_v2  ;;  %321 = vadd.xlane.f32.xlu1 %v320_v63  ;;  %v329_v6 = vsel %vm148_vm0, %v144_v49, 0.0  ;;  %v1312_v49 = vadd.s32 4294967176, %v1172_v45 }
  0x8e   :  { %276 = vadd.xlane.f32.xlu0 %v275_v3  ;;  %v545_v17 = vsel %vm544_vm2, %v543_v11, %v541_v13  ;;  %v63_v11 = vld [vmem:[%s1466_s0 + $0x178] sm:$0xff] }
  0x8f   :  { %279 = vadd.xlane.f32.xlu2 %v278_v4  ;;  %v549_v21 = vsel %vm548_vm3, %v547_v7, %v545_v17  ;;  %v284_v7 = vsel %vm148_vm0, %v129_v50, 0.0  ;;  %v131_v20 = vmul.f32 %v898_v1, %v63_v11 }
  0x90   :  { %v553_v24 = vsel %vm552_vm4, %v551_v16, %v549_v21  ;;  %v181_v26 = vpop.xlane.xlu1 %180  ;;  %v145_v21 = vmul.f32 %v898_v1, %v77_v12 }
  0x91   :  { %v178_v27 = vpop.xlane.xlu0 %177  ;;  %v730_v28 = vpop.eup %729  ;;  %v557_v29 = vsel %vm556_vm5, %v555_v14, %v553_v24  ;;  %v353_v30 = vadd.f32 %v1137_v19, %v181_v26  ;;  %v78_v14 = vld [vmem:[%s1466_s0 + $0x1f0] sm:$0xff]  ;;  %v1290_v24 = vadd.s32 4294967200, %v1172_v45  ;;  %s871_s0 = smov [#allocation3]  }
  0x92   :  { %v352_v31 = vadd.f32 %v1137_v19, %v178_v27  ;;  %v184_v32 = vpop.xlane.xlu2 %183  ;;  %v732_v33 = vpop.eup %731  ;;  %v563_v34 = vperm.slane %v730_v28, %v1214_v15  ;;  %v146_v26 = vmul.f32 %v898_v1, %v78_v14  ;;  %v1294_v27 = vadd.s32 4294967184, %v1172_v45  ;;  %s704_s30 = sshll.u32 %s871_s0, 4  ;;  %s705_s30 = int_to_ptr.vmem [resolvable:$true] %s704_s30 }
  0x93   :  { %v354_v35 = vadd.f32 %v1137_v19, %v184_v32  ;;  %v734_v38 = vpop.eup %733  ;;  %v559_v39 = vperm.slane %v732_v33, %v1222_v22  ;;  %735 = vtanh.f32 %v353_v30 }
  0x94   :  { %v567_v43 = vperm.slane %v734_v38, %v1227_v25  ;;  %737 = vtanh.f32 %v352_v31  ;;  %v332_v38 = vsel %vm148_vm0, %v145_v21, 0.0  ;;  %v335_v41 = vsel %vm148_vm0, %v146_v26, 0.0 }
  0x95   :  { %v561_v46 = vsel %vm560_vm6, %v559_v39, %v557_v29  ;;  %739 = vtanh.f32 %v354_v35  ;;  %282 = vadd.xlane.f32.xlu1 %v281_v36 }
  0x96   :  { %324 = vadd.xlane.f32.xlu0 %v323_v37  ;;  %v565_v47 = vsel %vm564_vm7, %v563_v34, %v561_v46  ;;  %v290_v37 = vsel %vm148_vm0, %v131_v20, 0.0  ;;  %v147_v46 = vmul.f32 %v898_v1, %v79_v42 }
  0x97   :  { %327 = vadd.xlane.f32.xlu2 %v326_v40  ;;  %v569_v53 = vsel %vm568_vm8, %v567_v43, %v565_v47 }
  0x98   :  { %v190_v60 = vpop.xlane.xlu1 %189 }
  0x99   :  { %v187_v61 = vpop.xlane.xlu0 %186  ;;  %v736_v62 = vpop.eup %735  ;;  %v356_v63 = vadd.f32 %v1137_v19, %v190_v60 }
  0x9a   :  { %v355_v0 = vadd.f32 %v1137_v19, %v187_v61  ;;  %v193_v2 = vpop.xlane.xlu2 %192  ;;  %v738_v3 = vpop.eup %737  ;;  %v575_v4 = vperm.slane %v736_v62, %v1251_v48 }
  0x9b   :  { %v357_v5 = vadd.f32 %v1137_v19, %v193_v2  ;;  %v740_v8 = vpop.eup %739  ;;  %v571_v9 = vperm.slane %v738_v3, %v1257_v56  ;;  %741 = vtanh.f32 %v356_v63  ;;  %v338_v3 = vsel %vm148_vm0, %v147_v46, 0.0 }
  0x9c   :  { %v579_v13 = vperm.slane %v740_v8, %v1261_v58  ;;  %743 = vtanh.f32 %v355_v0  ;;  %vm691_vm0 = vcmask 1041409  }
  0x9d   :  { %v573_v16 = vsel %vm572_vm9, %v571_v9, %v569_v53  ;;  %745 = vtanh.f32 %v357_v5  ;;  %330 = vadd.xlane.f32.xlu1 %v329_v6 }
  0x9e   :  { %285 = vadd.xlane.f32.xlu0 %v284_v7  ;;  %v577_v17 = vsel %vm576_vm10, %v575_v4, %v573_v16 }
  0x9f   :  { %288 = vadd.xlane.f32.xlu2 %v287_v10  ;;  %v581_v23 = vsel %vm580_vm11, %v579_v13, %v577_v17 }
  0xa0   :  { %v199_v28 = vpop.xlane.xlu1 %198 }
  0xa1   :  { %v196_v29 = vpop.xlane.xlu0 %195  ;;  %v742_v30 = vpop.eup %741  ;;  %v359_v31 = vadd.f32 %v1137_v19, %v199_v28 }
  0xa2   :  { %v358_v32 = vadd.f32 %v1137_v19, %v196_v29  ;;  %v202_v33 = vpop.xlane.xlu2 %201  ;;  %v744_v34 = vpop.eup %743  ;;  %v587_v35 = vperm.slane %v742_v30, %v1284_v18 }
  0xa3   :  { %v360_v36 = vadd.f32 %v1137_v19, %v202_v33  ;;  %v746_v39 = vpop.eup %745  ;;  %v583_v40 = vperm.slane %v744_v34, %v1290_v24  ;;  %747 = vtanh.f32 %v359_v31 }
  0xa4   :  { %v591_v43 = vperm.slane %v746_v39, %v1294_v27  ;;  %749 = vtanh.f32 %v358_v32 }
  0xa5   :  { %v585_v44 = vsel %vm584_vm12, %v583_v40, %v581_v23  ;;  %751 = vtanh.f32 %v360_v36  ;;  %291 = vadd.xlane.f32.xlu1 %v290_v37 }
  0xa6   :  { %333 = vadd.xlane.f32.xlu0 %v332_v38  ;;  %v589_v47 = vsel %vm588_vm13, %v587_v35, %v585_v44 }
  0xa7   :  { %336 = vadd.xlane.f32.xlu2 %v335_v41  ;;  %v593_v50 = vsel %vm592_vm14, %v591_v43, %v589_v47 }
  0xa8   :  { %v208_v53 = vpop.xlane.xlu1 %207 }
  0xa9   :  { %v205_v57 = vpop.xlane.xlu0 %204  ;;  %v748_v60 = vpop.eup %747  ;;  %v362_v61 = vadd.f32 %v1137_v19, %v208_v53 }
  0xaa   :  { %v361_v62 = vadd.f32 %v1137_v19, %v205_v57  ;;  %v211_v63 = vpop.xlane.xlu2 %210  ;;  %v750_v0 = vpop.eup %749  ;;  %v598_v2 = vperm.slane %v748_v60, %v1172_v45 }
  0xab   :  { %v363_v1 = vadd.f32 %v1137_v19, %v211_v63  ;;  %v752_v4 = vpop.eup %751  ;;  %v595_v5 = vperm.slane %v750_v0, %v1312_v49  ;;  %753 = vtanh.f32 %v362_v61 }
  0xac   :  { %v599_v6 = vperm.slane %v752_v4, %v1181_v52  ;;  %755 = vtanh.f32 %v361_v62 }
  0xad   :  { %757 = vtanh.f32 %v363_v1  ;;  %v1323_v7 = vsel %vm596_vm15, %v595_v5, %v593_v50 }
  0xae   :  { %339 = vadd.xlane.f32.xlu0 %v338_v3  ;;  %v600_v8 = vsel %vm540_vm1, %v599_v6, %v598_v2 }
  0xb0   :  { %v217_v9 = vpop.xlane.xlu1 %216 }
  0xb1   :  { %v214_v10 = vpop.xlane.xlu0 %213  ;;  %v754_v11 = vpop.eup %753  ;;  %v365_v12 = vadd.f32 %v1137_v19, %v217_v9 }
  0xb2   :  { %v364_v13 = vadd.f32 %v1137_v19, %v214_v10  ;;  %v220_v14 = vpop.xlane.xlu2 %219  ;;  %v756_v16 = vpop.eup %755  ;;  %v603_v17 = vperm.slane %v754_v11, %v1178_v51 }
  0xb3   :  { %v366_v20 = vadd.f32 %v1137_v19, %v220_v14  ;;  %v758_v21 = vpop.eup %757  ;;  %v601_v23 = vperm.slane %v756_v16, %v1184_v54  ;;  %759 = vtanh.f32 %v365_v12 }
  0xb4   :  { %v605_v26 = vperm.slane %v758_v21, %v1187_v55  ;;  %761 = vtanh.f32 %v364_v13 }
  0xb5   :  { %v602_v28 = vsel %vm544_vm2, %v601_v23, %v600_v8  ;;  %763 = vtanh.f32 %v366_v20 }
  0xb6   :  { %v604_v29 = vsel %vm548_vm3, %v603_v17, %v602_v28 }
  0xb7   :  { %v606_v30 = vsel %vm552_vm4, %v605_v26, %v604_v29 }
  0xb8   :  { %v226_v31 = vpop.xlane.xlu1 %225 }
  0xb9   :  { %v223_v32 = vpop.xlane.xlu0 %222  ;;  %v760_v33 = vpop.eup %759  ;;  %v368_v34 = vadd.f32 %v1137_v19, %v226_v31 }
  0xba   :  { %v367_v35 = vadd.f32 %v1137_v19, %v223_v32  ;;  %v229_v36 = vpop.xlane.xlu2 %228  ;;  %v762_v37 = vpop.eup %761  ;;  %v609_v38 = vperm.slane %v760_v33, %v1222_v22 }
  0xbb   :  { %v369_v39 = vadd.f32 %v1137_v19, %v229_v36  ;;  %v764_v40 = vpop.eup %763  ;;  %v607_v41 = vperm.slane %v762_v37, %v1190_v59  ;;  %765 = vtanh.f32 %v368_v34 }
  0xbc   :  { %v611_v42 = vperm.slane %v764_v40, %v1214_v15  ;;  %767 = vtanh.f32 %v367_v35 }
  0xbd   :  { %v608_v43 = vsel %vm556_vm5, %v607_v41, %v606_v30  ;;  %769 = vtanh.f32 %v369_v39 }
  0xbe   :  { %v610_v44 = vsel %vm560_vm6, %v609_v38, %v608_v43 }
  0xbf   :  { %v612_v46 = vsel %vm564_vm7, %v611_v42, %v610_v44 }
  0xc0   :  { %v235_v47 = vpop.xlane.xlu1 %234 }
  0xc1   :  { %v232_v50 = vpop.xlane.xlu0 %231  ;;  %v766_v53 = vpop.eup %765  ;;  %v371_v57 = vadd.f32 %v1137_v19, %v235_v47 }
  0xc2   :  { %v370_v60 = vadd.f32 %v1137_v19, %v232_v50  ;;  %v238_v61 = vpop.xlane.xlu2 %237  ;;  %v768_v62 = vpop.eup %767  ;;  %v615_v63 = vperm.slane %v766_v53, %v1257_v56 }
  0xc3   :  { %v372_v0 = vadd.f32 %v1137_v19, %v238_v61  ;;  %v770_v2 = vpop.eup %769  ;;  %v613_v1 = vperm.slane %v768_v62, %v1227_v25  ;;  %771 = vtanh.f32 %v371_v57 }
  0xc4   :  { %v617_v3 = vperm.slane %v770_v2, %v1251_v48  ;;  %773 = vtanh.f32 %v370_v60 }
  0xc5   :  { %v614_v4 = vsel %vm568_vm8, %v613_v1, %v612_v46  ;;  %775 = vtanh.f32 %v372_v0 }
  0xc6   :  { %v616_v5 = vsel %vm572_vm9, %v615_v63, %v614_v4 }
  0xc7   :  { %v618_v6 = vsel %vm576_vm10, %v617_v3, %v616_v5 }
  0xc8   :  { %v244_v8 = vpop.xlane.xlu1 %243 }
  0xc9   :  { %v241_v9 = vpop.xlane.xlu0 %240  ;;  %v772_v10 = vpop.eup %771  ;;  %v374_v11 = vadd.f32 %v1137_v19, %v244_v8 }
  0xca   :  { %v373_v12 = vadd.f32 %v1137_v19, %v241_v9  ;;  %v247_v13 = vpop.xlane.xlu2 %246  ;;  %v774_v14 = vpop.eup %773  ;;  %v621_v16 = vperm.slane %v772_v10, %v1290_v24 }
  0xcb   :  { %v776_v17 = vpop.eup %775  ;;  %v619_v20 = vperm.slane %v774_v14, %v1261_v58  ;;  %777 = vtanh.f32 %v374_v11  ;;  %v375_v23 = vadd.f32 %v1137_v19, %v247_v13 }
  0xcc   :  { %v623_v21 = vperm.slane %v776_v17, %v1284_v18  ;;  %779 = vtanh.f32 %v373_v12 }
  0xcd   :  { %v620_v26 = vsel %vm580_vm11, %v619_v20, %v618_v6  ;;  %781 = vtanh.f32 %v375_v23 }
  0xce   :  { %v622_v28 = vsel %vm584_vm12, %v621_v16, %v620_v26 }
  0xcf   :  { %v624_v29 = vsel %vm588_vm13, %v623_v21, %v622_v28 }
  0xd0   :  { %v253_v30 = vpop.xlane.xlu1 %252 }
  0xd1   :  { %v250_v31 = vpop.xlane.xlu0 %249  ;;  %v778_v32 = vpop.eup %777  ;;  %v377_v3 = vadd.f32 %v1137_v19, %v253_v30 }
  0xd2   :  { %v376_v33 = vadd.f32 %v1137_v19, %v250_v31  ;;  %v256_v34 = vpop.xlane.xlu2 %255  ;;  %v780_v35 = vpop.eup %779  ;;  %v627_v36 = vperm.slane %v778_v32, %v1312_v49 }
  0xd3   :  { %v625_v37 = vperm.slane %v780_v35, %v1294_v27  ;;  %v782_v39 = vpop.eup %781  ;;  %v378_v4 = vadd.f32 %v1137_v19, %v256_v34 }
  0xd4   :  { %783 = vtanh.f32 %v376_v33  ;;  %v629_v44 = vperm.slane %v782_v39, %v1172_v45 }
  0xd5   :  { %v626_v38 = vsel %vm592_vm14, %v625_v37, %v624_v29  ;;  %785 = vtanh.f32 %v377_v3 }
  0xd6   :  { %v628_v40 = vsel %vm596_vm15, %v627_v36, %v626_v38  ;;  %787 = vtanh.f32 %v378_v4 }
  0xd7   :  { %v1368_v41 = vsel %vm691_vm0, %v628_v40, %v1323_v7 }
  0xd8   :  { %v262_v42 = vpop.xlane.xlu1 %261 }
  0xd9   :  { %v259_v43 = vpop.xlane.xlu0 %258  ;;  %v380_v10 = vadd.f32 %v1137_v19, %v262_v42 }
  0xda   :  { %v265_v46 = vpop.xlane.xlu2 %264  ;;  %v784_v47 = vpop.eup %783  ;;  %v379_v8 = vadd.f32 %v1137_v19, %v259_v43 }
  0xdb   :  { %v630_v50 = vperm.slane %v784_v47, %v1181_v52  ;;  %v786_v13 = vpop.eup %785  ;;  %v381_v14 = vadd.f32 %v1137_v19, %v265_v46 }
  0xdc   :  { %789 = vtanh.f32 %v379_v8  ;;  %v788_v26 = vpop.eup %787  ;;  %v632_v28 = vperm.slane %v786_v13, %v1184_v54 }
  0xdd   :  { %v631_v53 = vsel %vm540_vm1, %v630_v50, %v629_v44  ;;  %791 = vtanh.f32 %v380_v10  ;;  %v634_v32 = vperm.slane %v788_v26, %v1178_v51 }
  0xde   :  { %v633_v35 = vsel %vm544_vm2, %v632_v28, %v631_v53 }
  0xdf   :  { %v635_v46 = vsel %vm548_vm3, %v634_v32, %v633_v35 }
  0xe0   :  { %v271_v57 = vpop.xlane.xlu1 %270 }
  0xe1   :  { %v268_v60 = vpop.xlane.xlu0 %267  ;;  %v383_v31 = vadd.f32 %v1137_v19, %v271_v57 }
  0xe2   :  { %v274_v61 = vpop.xlane.xlu2 %273  ;;  %v382_v16 = vadd.f32 %v1137_v19, %v268_v60  ;;  %v790_v30 = vpop.eup %789 }
  0xe3   :  { %v792_v34 = vpop.eup %791  ;;  %v636_v36 = vperm.slane %v790_v30, %v1187_v55  ;;  %v384_v38 = vadd.f32 %v1137_v19, %v274_v61 }
  0xe4   :  { %v638_v47 = vperm.slane %v792_v34, %v1190_v59 }
  0xe5   :  { %v637_v60 = vsel %vm552_vm4, %v636_v36, %v635_v46 }
  0xe8   :  { %v298_v62 = vpop.xlane.xlu1 %297 }
  0xe9   :  { %v295_v63 = vpop.xlane.xlu0 %294  ;;  %v392_v11 = vadd.f32 %v1137_v19, %v298_v62 }
  0xea   :  { %v301_v0 = vpop.xlane.xlu2 %300  ;;  %v391_v12 = vadd.f32 %v1137_v19, %v295_v63 }
  0xeb   :  { %793 = vtanh.f32 %v392_v11  ;;  %v393_v21 = vadd.f32 %v1137_v19, %v301_v0 }
  0xec   :  { %795 = vtanh.f32 %v391_v12 }
  0xed   :  { %797 = vtanh.f32 %v381_v14 }
  0xee   :  { %799 = vtanh.f32 %v382_v16 }
  0xef   :  { %801 = vtanh.f32 %v393_v21 }
  0xf0   :  { %v307_v2 = vpop.xlane.xlu1 %306 }
  0xf1   :  { %v304_v1 = vpop.xlane.xlu0 %303  ;;  %v395_v33 = vadd.f32 %v1137_v19, %v307_v2  ;;  %v794_v37 = vpop.eup %793 }
  0xf2   :  { %v310_v7 = vpop.xlane.xlu2 %309  ;;  %v394_v29 = vadd.f32 %v1137_v19, %v304_v1  ;;  %v796_v39 = vpop.eup %795  ;;  %v661_v63 = vperm.slane %v794_v37, %v1181_v52 }
  0xf3   :  { %v396_v40 = vadd.f32 %v1137_v19, %v310_v7  ;;  %v798_v44 = vpop.eup %797  ;;  %v660_v0 = vperm.slane %v796_v39, %v1172_v45 }
  0xf4   :  { %803 = vtanh.f32 %v394_v29  ;;  %v800_v57 = vpop.eup %799  ;;  %v640_v7 = vperm.slane %v798_v44, %v1222_v22 }
  0xf5   :  { %805 = vtanh.f32 %v383_v31  ;;  %v802_v61 = vpop.eup %801  ;;  %v642_v8 = vperm.slane %v800_v57, %v1214_v15  ;;  %v662_v11 = vsel %vm540_vm1, %v661_v63, %v660_v0  ;;  %vm693_vm1 = vcmask 1042434  }
  0xf6   :  { %807 = vtanh.f32 %v395_v33  ;;  %v663_v52 = vperm.slane %v802_v61, %v1184_v54 }
  0xf7   :  { %809 = vtanh.f32 %v384_v38 }
  0xf8   :  { %v316_v5 = vpop.xlane.xlu1 %315  ;;  %811 = vtanh.f32 %v396_v40  ;;  %v664_v29 = vsel %vm544_vm2, %v663_v52, %v662_v11  ;;  %vm695_vm2 = vcmask 1043459  }
  0xf9   :  { %v313_v6 = vpop.xlane.xlu0 %312  ;;  %v398_v2 = vadd.f32 %v1137_v19, %v316_v5 }
  0xfa   :  { %v319_v9 = vpop.xlane.xlu2 %318  ;;  %v397_v50 = vadd.f32 %v1137_v19, %v313_v6  ;;  %v804_v1 = vpop.eup %803  ;;  %v639_v6 = vsel %vm556_vm5, %v638_v47, %v637_v60 }
  0xfb   :  { %v399_v3 = vadd.f32 %v1137_v19, %v319_v9  ;;  %v806_v4 = vpop.eup %805  ;;  %v665_v12 = vperm.slane %v804_v1, %v1178_v51  ;;  %v641_v13 = vsel %vm560_vm6, %v640_v7, %v639_v6 }
  0xfc   :  { %813 = vtanh.f32 %v397_v50  ;;  %v808_v5 = vpop.eup %807  ;;  %v644_v14 = vperm.slane %v806_v4, %v1227_v25  ;;  %v643_v54 = vsel %vm564_vm7, %v642_v8, %v641_v13 }
  0xfd   :  { %v810_v21 = vpop.eup %809  ;;  %v666_v32 = vsel %vm548_vm3, %v665_v12, %v664_v29 }
  0xfe   :  { %v812_v51 = vpop.eup %811  ;;  %v646_v34 = vperm.slane %v810_v21, %v1257_v56  ;;  %v645_v36 = vsel %vm568_vm8, %v644_v14, %v643_v54 }
  0xff   :  { %v669_v37 = vperm.slane %v812_v51, %v1190_v59 }
 0x100   :  { %v322_v17 = vpop.xlane.xlu1 %321  ;;  %v647_v47 = vsel %vm572_vm9, %v646_v34, %v645_v36 }
 0x101   :  { %v277_v20 = vpop.xlane.xlu0 %276  ;;  %v400_v9 = vadd.f32 %v1137_v19, %v322_v17  ;;  %v667_v17 = vperm.slane %v808_v5, %v1187_v55 }
 0x102   :  { %v280_v23 = vpop.xlane.xlu2 %279  ;;  %v385_v62 = vadd.f32 %v1137_v19, %v277_v20  ;;  %v814_v31 = vpop.eup %813 }
 0x103   :  { %v386_v10 = vadd.f32 %v1137_v19, %v280_v23  ;;  %v668_v39 = vsel %vm552_vm4, %v667_v17, %v666_v32 }
 0x104   :  { %815 = vtanh.f32 %v385_v62  ;;  %v670_v60 = vsel %vm556_vm5, %v669_v37, %v668_v39 }
 0x105   :  { %817 = vtanh.f32 %v398_v2 }
 0x106   :  { %819 = vtanh.f32 %v399_v3 }
 0x107   :  { %821 = vtanh.f32 %v386_v10 }
 0x108   :  { %v283_v42 = vpop.xlane.xlu1 %282 }
 0x109   :  { %v325_v43 = vpop.xlane.xlu0 %324  ;;  %v387_v45 = vadd.f32 %v1137_v19, %v283_v42 }
 0x10a   :  { %v328_v53 = vpop.xlane.xlu2 %327  ;;  %v401_v23 = vadd.f32 %v1137_v19, %v325_v43  ;;  %v816_v33 = vpop.eup %815  ;;  %v671_v43 = vperm.slane %v814_v31, %v1222_v22 }
 0x10b   :  { %823 = vtanh.f32 %v387_v45  ;;  %v818_v35 = vpop.eup %817  ;;  %v402_v38 = vadd.f32 %v1137_v19, %v328_v53  ;;  %v648_v44 = vperm.slane %v816_v33, %v1251_v48 }
 0x10c   :  { %825 = vtanh.f32 %v400_v9  ;;  %v820_v55 = vpop.eup %819  ;;  %v673_v0 = vperm.slane %v818_v35, %v1214_v15  ;;  %v672_v7 = vsel %vm560_vm6, %v671_v43, %v670_v60 }
 0x10d   :  { %v822_v42 = vpop.eup %821  ;;  %v649_v3 = vsel %vm576_vm10, %v648_v44, %v647_v47  ;;  %v675_v10 = vperm.slane %v820_v55, %v1227_v25 }
 0x10e   :  { %v650_v22 = vperm.slane %v822_v42, %v1261_v58  ;;  %v674_v15 = vsel %vm564_vm7, %v673_v0, %v672_v7 }
 0x10f   :  { %v676_v25 = vsel %vm568_vm8, %v675_v10, %v674_v15 }
 0x110   :  { %v331_v16 = vpop.xlane.xlu1 %330  ;;  %v651_v45 = vsel %vm580_vm11, %v650_v22, %v649_v3 }
 0x111   :  { %v286_v20 = vpop.xlane.xlu0 %285  ;;  %v403_v40 = vadd.f32 %v1137_v19, %v331_v16  ;;  %v824_v46 = vpop.eup %823 }
 0x112   :  { %v388_v26 = vadd.f32 %v1137_v19, %v286_v20  ;;  %v289_v28 = vpop.xlane.xlu2 %288  ;;  %v826_v59 = vpop.eup %825  ;;  %v652_v4 = vperm.slane %v824_v46, %v1290_v24 }
 0x113   :  { %v389_v30 = vadd.f32 %v1137_v19, %v289_v28  ;;  %v677_v52 = vperm.slane %v826_v59, %v1257_v56 }
 0x114   :  { %827 = vtanh.f32 %v388_v26  ;;  %v653_v11 = vsel %vm584_vm12, %v652_v4, %v651_v45 }
 0x115   :  { %829 = vtanh.f32 %v401_v23  ;;  %v678_v54 = vsel %vm572_vm9, %v677_v52, %v676_v25 }
 0x116   :  { %831 = vtanh.f32 %v389_v30 }
 0x117   :  { %833 = vtanh.f32 %v402_v38 }
 0x118   :  { %v292_v50 = vpop.xlane.xlu1 %291  ;;  %835 = vtanh.f32 %v403_v40 }
 0x119   :  { %v334_v57 = vpop.xlane.xlu0 %333  ;;  %v390_v53 = vadd.f32 %v1137_v19, %v292_v50 }
 0x11a   :  { %v404_v62 = vadd.f32 %v1137_v19, %v334_v57  ;;  %v337_v61 = vpop.xlane.xlu2 %336  ;;  %v828_v63 = vpop.eup %827 }
 0x11b   :  { %v405_v2 = vadd.f32 %v1137_v19, %v337_v61  ;;  %v830_v1 = vpop.eup %829  ;;  %837 = vtanh.f32 %v390_v53  ;;  %v654_v8 = vperm.slane %v828_v63, %v1284_v18 }
 0x11c   :  { %v832_v6 = vpop.eup %831  ;;  %839 = vtanh.f32 %v404_v62  ;;  %v679_v12 = vperm.slane %v830_v1, %v1251_v48 }
 0x11d   :  { %841 = vtanh.f32 %v405_v2  ;;  %v834_v5 = vpop.eup %833  ;;  %v656_v9 = vperm.slane %v832_v6, %v1294_v27  ;;  %v655_v14 = vsel %vm588_vm13, %v654_v8, %v653_v11 }
 0x11e   :  { %v836_v13 = vpop.eup %835  ;;  %v681_v23 = vperm.slane %v834_v5, %v1261_v58  ;;  %v680_v48 = vsel %vm576_vm10, %v679_v12, %v678_v54 }
 0x11f   :  { %v683_v28 = vperm.slane %v836_v13, %v1290_v24  ;;  %v657_v51 = vsel %vm592_vm14, %v656_v9, %v655_v14 }
 0x120   :  { %v682_v31 = vsel %vm580_vm11, %v681_v23, %v680_v48 }
 0x121   :  { %v340_v16 = vpop.xlane.xlu0 %339  ;;  %v838_v20 = vpop.eup %837  ;;  %v684_v58 = vsel %vm584_vm12, %v683_v28, %v682_v31 }
 0x122   :  { %v406_v21 = vadd.f32 %v1137_v19, %v340_v16  ;;  %v840_v56 = vpop.eup %839  ;;  %v658_v26 = vperm.slane %v838_v20, %v1312_v49 }
 0x123   :  { %v842_v29 = vpop.eup %841  ;;  %v685_v17 = vperm.slane %v840_v56, %v1284_v18 }
 0x124   :  { %843 = vtanh.f32 %v406_v21  ;;  %v659_v19 = vsel %vm596_vm15, %v658_v26, %v657_v51  ;;  %v687_v32 = vperm.slane %v842_v29, %v1294_v27 }
 0x125   :  { %v694_v30 = vsel %vm693_vm1, %v659_v19, %v1368_v41  ;;  %v686_v33 = vsel %vm588_vm13, %v685_v17, %v684_v58 }
 0x126   :  { %v688_v24 = vsel %vm592_vm14, %v687_v32, %v686_v33 }
 0x12a   :  { %v844_v34 = vpop.eup %843 }
 0x12b   :  { %v689_v18 = vperm.slane %v844_v34, %v1312_v49 }
 0x12d   :  { %v690_v41 = vsel %vm596_vm15, %v689_v18, %v688_v24 }
 0x12e   :  { %v696_v35 = vsel %vm695_vm2, %v690_v41, %v694_v30 }
 0x12f   :  { %698 = vst [vmem:[#allocation3] sm:$0xf] %v696_v35 }
 0x130   :  { %709 = dma.vmem_to_hbm [thread:$0]  %s705_s30, 64, %s707_s2, [#allocation4]  }
 0x131   :  { %869 = dma.done.wait [#allocation4], 64  }
 0x132   :  { %870 = vsyncadd [#allocation4], 4294967232 }
 0x133   :  { %714 = vsyncpa [#allocation4], 1 }

</bundles_post_ra>
